<compile_context>
chip_gen: v6e
topology: v6e:2x2x1
jax: 0.10.0
libtpu: 0.0.40
codegen_flags: <defaults>
</compile_context>

<pallas_src>
import functools

import numpy as np
import jax
import jax.numpy as jnp
from jax.experimental import pallas as pl
from jax.experimental.pallas import tpu as pltpu


def _interp_matrix(out_size: int, in_size: int) -> np.ndarray:
    """Bilinear interpolation matrix (out_size, in_size) matching
    F.interpolate(mode='bilinear', align_corners=False) along one axis."""
    o = np.arange(out_size, dtype=np.float32)
    scale = in_size / out_size
    src = np.maximum((o + 0.5) * scale - 0.5, 0.0)   # PyTorch clamps negative src to 0
    i0 = np.minimum(np.floor(src).astype(np.int32), in_size - 1)
    i1 = np.minimum(i0 + 1, in_size - 1)
    lam1 = (src - i0).astype(np.float32)
    lam0 = 1.0 - lam1
    w = np.zeros((out_size, in_size), dtype=np.float32)
    rows = np.arange(out_size)
    w[rows, i0] += lam0
    w[rows, i1] += lam1          # i0 == i1 at the clamped edge -> weight 1.0, same as torch
    return w


def _sis_kernel(x_ref, wh_ref, wwt_ref, o_ref, t_ref, *, logit_threshold):
    # Grid = (K, H-tiles, W-tiles), W innermost ("arbitrary").
    # Row-interpolated slab t = Wh_tile @ x is reused across all W tiles of the
    # same (query, H-tile); recompute only when the W-tile index resets.
    @pl.when(pl.program_id(2) == 0)
    def _():
        t_ref[...] = jnp.dot(
            wh_ref[...], x_ref[0], preferred_element_type=jnp.float32
        ).astype(jnp.bfloat16)

    # Column interpolation: (TH, w_in) @ (w_in, TW) -> (TH, TW) f32 logits.
    y = jnp.dot(t_ref[...], wwt_ref[...], preferred_element_type=jnp.float32)
    # sigmoid(y) > thr  <=>  y > logit(thr)  (sigmoid is strictly monotone).
    o_ref[0] = (y > logit_threshold).astype(jnp.int8)


def visualize_sis(pred_masks, keep, orig_target_sizes, threshold: float = 0.5,
                  tile_h: int = 256, tile_w: int = 512):
    max_h, max_w = int(orig_target_sizes[0]), int(orig_target_sizes[1])
    keep_np = np.asarray(keep).astype(bool)

    if int(keep_np.sum()) == 0:
        # torch.zeros((1,) + orig_target_sizes) -> float zeros (matches reference)
        return jnp.zeros((1, max_h, max_w), dtype=jnp.float32)

    # TODO(synk): boolean gather of kept queries is data-dependent (dynamic K);
    # done host-side as glue rather than inside the kernel.
    x = jnp.asarray(pred_masks)[0, keep_np].astype(jnp.bfloat16)   # (K, h_in, w_in)
    K, h_in, w_in = x.shape

    wh = jnp.asarray(_interp_matrix(max_h, h_in), dtype=jnp.bfloat16)      # (max_h, h_in)
    ww_t = jnp.asarray(_interp_matrix(max_w, w_in).T, dtype=jnp.bfloat16)  # (w_in, max_w)

    # Spatial tile selection: full extent if small enough, otherwise a
    # (8,128)-aligned tile so output stores stay unmasked and lane-dense.
    if max_h <= tile_h:
        TH = max_h
    else:
        TH = max(8, (tile_h // 8) * 8)
    if max_w <= tile_w:
        TW = max_w
    else:
        TW = max(128, (tile_w // 128) * 128)
    nh = pl.cdiv(max_h, TH)
    nw = pl.cdiv(max_w, TW)

    thr = float(threshold)
    if thr <= 0.0:
        logit = float(-np.inf)
    elif thr >= 1.0:
        logit = float(np.inf)
    else:
        logit = float(np.log(thr / (1.0 - thr)))

    flops = int(2 * K * max_h * w_in * (h_in + max_w))
    bytes_accessed = int(K * max_h * max_w                # int8 output
                         + 2 * K * h_in * w_in            # bf16 masks
                         + 2 * (max_h * h_in + w_in * max_w))  # bf16 interp mats

    out_i8 = pl.pallas_call(
        functools.partial(_sis_kernel, logit_threshold=logit),
        out_shape=jax.ShapeDtypeStruct((K, max_h, max_w), jnp.int8),
        grid=(K, nh, nw),
        in_specs=[
            pl.BlockSpec((1, h_in, w_in), lambda k, i, j: (k, 0, 0)),
            pl.BlockSpec((TH, h_in), lambda k, i, j: (i, 0)),
            pl.BlockSpec((w_in, TW), lambda k, i, j: (0, j)),
        ],
        out_specs=pl.BlockSpec((1, TH, TW), lambda k, i, j: (k, i, j)),
        scratch_shapes=[pltpu.VMEM((TH, w_in), jnp.bfloat16)],
        compiler_params=pltpu.CompilerParams(
            dimension_semantics=("parallel", "parallel", "arbitrary")),
        cost_estimate=pl.CostEstimate(
            flops=flops, transcendentals=0, bytes_accessed=bytes_accessed),
    )(x, wh, ww_t)

    # torch reference returns a bool tensor; int8 0/1 -> bool is a cheap cast.
    return out_i8.astype(jnp.bool_)


if __name__ == "__main__":
    key = jax.random.PRNGKey(0)
    num_queries, h_in, w_in = 8, 16, 16
    pred_masks = jax.random.normal(key, (1, num_queries, h_in, w_in), dtype=jnp.float32)
    keep = jnp.array([True, False, True, True, False, False, True, False])

    # Case 1: single-tile path, 32x32 target.
    out = visualize_sis(pred_masks, keep, (32, 32), threshold=0.5)
    out = jax.block_until_ready(out)
    assert out.shape == (4, 32, 32), out.shape
    assert out.dtype == jnp.bool_, out.dtype

    # Agreement check against the same bf16 matmul pipeline in plain XLA.
    keep_np = np.asarray(keep).astype(bool)
    x_ref = jnp.asarray(pred_masks)[0, keep_np].astype(jnp.bfloat16)
    wh_ref = jnp.asarray(_interp_matrix(32, h_in), jnp.bfloat16)
    ww_ref = jnp.asarray(_interp_matrix(32, w_in), jnp.bfloat16)
    t_ref = jnp.einsum("oh,khw->kow", wh_ref, x_ref,
                       preferred_element_type=jnp.float32).astype(jnp.bfloat16)
    y_ref = jnp.einsum("kow,pw->kop", t_ref, ww_ref,
                       preferred_element_type=jnp.float32)
    ref = y_ref > 0.0
    mismatch = float(jnp.mean((out != ref).astype(jnp.float32)))
    assert mismatch <= 0.02, f"mask mismatch fraction {mismatch}"

    # Case 2: multi-tile path (W tiled, exercises the t-reuse pl.when guard).
    out2 = visualize_sis(pred_masks, keep, (16, 256), threshold=0.5,
                         tile_h=16, tile_w=128)
    out2 = jax.block_until_ready(out2)
    assert out2.shape == (4, 16, 256) and out2.dtype == jnp.bool_

    # Case 3: empty-keep branch -> float32 zeros, matching torch.
    empty = visualize_sis(pred_masks, jnp.zeros((num_queries,), dtype=bool), (32, 32))
    empty = jax.block_until_ready(empty)
    assert empty.shape == (1, 32, 32) and empty.dtype == jnp.float32
    assert float(jnp.sum(empty)) == 0.0

    print("KERNEL_OK")
</pallas_src>

<mosaic_0001>
module attributes {stable_mosaic.version = 11 : i64} {
  func.func @_sis_kernel(%arg0: i32, %arg1: i32, %arg2: i32, %arg3: memref<1x16x16xbf16, #tpu.memory_space<vmem>>, %arg4: memref<32x16xbf16, #tpu.memory_space<vmem>>, %arg5: memref<16x32xbf16, #tpu.memory_space<vmem>>, %arg6: memref<1x32x32xi8, #tpu.memory_space<vmem>>, %arg7: memref<32x16xbf16, #tpu.memory_space<vmem>>) attributes {dimension_semantics = [#tpu.dimension_semantics<parallel>, #tpu.dimension_semantics<parallel>, #tpu.dimension_semantics<arbitrary>], iteration_bounds = array<i64: 4, 1, 1>, scalar_prefetch = 0 : i64, scratch_operands = 1 : i64, tpu.core_type = #tpu.core_type<tc>, window_params = [{transform_indices = @transform_0, window_bounds = array<i64: 1, 16, 16>}, {transform_indices = @transform_1, window_bounds = array<i64: 32, 16>}, {transform_indices = @transform_2, window_bounds = array<i64: 16, 32>}, {transform_indices = @transform_3, window_bounds = array<i64: 1, 32, 32>}]} {
    %c0_i32 = arith.constant 0 : i32
    %0 = arith.cmpi eq, %arg2, %c0_i32 : i32
    %1 = arith.extui %0 : i1 to i32
    %c0_i32_0 = arith.constant 0 : i32
    %2 = arith.cmpi ne, %1, %c0_i32_0 : i32
    scf.if %2 {
      %c0_8 = arith.constant 0 : index
      %c0_9 = arith.constant 0 : index
      %12 = vector.load %arg4[%c0_8, %c0_9] : memref<32x16xbf16, #tpu.memory_space<vmem>>, vector<32x16xbf16>
      %c0_10 = arith.constant 0 : index
      %c0_11 = arith.constant 0 : index
      %c0_12 = arith.constant 0 : index
      %13 = vector.load %arg3[%c0_10, %c0_11, %c0_12] : memref<1x16x16xbf16, #tpu.memory_space<vmem>>, vector<1x16x16xbf16>
      %14 = vector.shape_cast %13 : vector<1x16x16xbf16> to vector<16x16xbf16>
      %cst_13 = arith.constant dense<0.000000e+00> : vector<32x16xf32>
      %15 = tpu.matmul %12, %14, %cst_13 {dimension_numbers = #tpu.dot_dimension_numbers<[1], [0], [0], [1], [0, 0, 1, 1], [], []>} : vector<32x16xbf16>, vector<16x16xbf16>, vector<32x16xf32> -> vector<32x16xf32>
      %16 = arith.truncf %15 : vector<32x16xf32> to vector<32x16xbf16>
      %c0_14 = arith.constant 0 : index
      %c0_15 = arith.constant 0 : index
      %17 = vector.load %arg7[%c0_14, %c0_15] : memref<32x16xbf16, #tpu.memory_space<vmem>>, vector<32x16xbf16>
      tpu.vector_store %arg7[%c0_14, %c0_15], %16 {strides = array<i32>} : memref<32x16xbf16, #tpu.memory_space<vmem>>, vector<32x16xbf16>,
    } else {
    }
    %c0 = arith.constant 0 : index
    %c0_1 = arith.constant 0 : index
    %3 = vector.load %arg7[%c0, %c0_1] : memref<32x16xbf16, #tpu.memory_space<vmem>>, vector<32x16xbf16>
    %c0_2 = arith.constant 0 : index
    %c0_3 = arith.constant 0 : index
    %4 = vector.load %arg5[%c0_2, %c0_3] : memref<16x32xbf16, #tpu.memory_space<vmem>>, vector<16x32xbf16>
    %cst = arith.constant dense<0.000000e+00> : vector<32x32xf32>
    %5 = tpu.matmul %3, %4, %cst {dimension_numbers = #tpu.dot_dimension_numbers<[1], [0], [0], [1], [0, 0, 1, 1], [], []>} : vector<32x16xbf16>, vector<16x32xbf16>, vector<32x32xf32> -> vector<32x32xf32>
    %cst_4 = arith.constant 0.000000e+00 : f32
    %6 = vector.broadcast %cst_4 : f32 to vector<32x32xf32>
    %7 = arith.cmpf ogt, %5, %6 : vector<32x32xf32>
    %8 = arith.extui %7 : vector<32x32xi1> to vector<32x32xi8>
    %c0_5 = arith.constant 0 : index
    %c0_6 = arith.constant 0 : index
    %c0_7 = arith.constant 0 : index
    %9 = vector.load %arg6[%c0_5, %c0_6, %c0_7] : memref<1x32x32xi8, #tpu.memory_space<vmem>>, vector<1x32x32xi8>
    %10 = vector.shape_cast %9 : vector<1x32x32xi8> to vector<32x32xi8>
    %11 = vector.shape_cast %8 : vector<32x32xi8> to vector<1x32x32xi8>
    tpu.vector_store %arg6[%c0_5, %c0_6, %c0_7], %11 {strides = array<i32>} : memref<1x32x32xi8, #tpu.memory_space<vmem>>, vector<1x32x32xi8>,
    return
  }
  func.func @transform_0(%arg0: i32, %arg1: i32, %arg2: i32) -> (i32, i32, i32) {
    %c0_i32 = arith.constant 0 : i32
    %c0_i32_0 = arith.constant 0 : i32
    %c0_i32_1 = arith.constant 0 : i32
    return %arg0, %c0_i32, %c0_i32_0 : i32, i32, i32
  }
  func.func @transform_1(%arg0: i32, %arg1: i32, %arg2: i32) -> (i32, i32) {
    %c0_i32 = arith.constant 0 : i32
    %c0_i32_0 = arith.constant 0 : i32
    return %arg1, %c0_i32 : i32, i32
  }
  func.func @transform_2(%arg0: i32, %arg1: i32, %arg2: i32) -> (i32, i32) {
    %c0_i32 = arith.constant 0 : i32
    %c0_i32_0 = arith.constant 0 : i32
    return %c0_i32, %arg2 : i32, i32
  }
  func.func @transform_3(%arg0: i32, %arg1: i32, %arg2: i32) -> (i32, i32, i32) {
    %c0_i32 = arith.constant 0 : i32
    return %arg0, %arg1, %arg2 : i32, i32, i32
  }
}

</mosaic_0001>

<bundles_post_ra>
// kernel: tpu_custom_call.1
= control target key start
LH: loop header
LB: loop body
LE: loop exit
PB: predicated region body
PF: predicated region fallthrough
CT: control target
= control target key end

     0   :  { %8 = vsyncpa [#allocation4], 0  ;;  %s992_s0 = inlined_call_operand.hbm [shape: bf16[4,16,16], index: 0, kind: input, shape index: {}]   ;;  %s993_s1 = inlined_call_operand.vmem [shape: bf16[32,16], index: 1, kind: input, shape index: {}]   ;;  %s994_s2 = inlined_call_operand.vmem [shape: bf16[16,32], index: 2, kind: input, shape index: {}]   ;;  %s995_s3 = inlined_call_operand.hbm [shape: s8[4,32,32], index: 3, kind: output, shape index: {}]  }
   0x1   :  { %10 = vsyncpa [#allocation4 + $0x1], 0 }
   0x2   :  { %11 = vsyncpa [#allocation5], 0 }
   0x3   :  { %13 = vsyncpa [#allocation5 + $0x1], 0  ;;  %s833_s12 = smov 0   ;;  %s835_s13 = smov 0  }
   0x4   :  { %s837_s14 = smov 0   ;;  %s839_s15 = smov 0  }
   0x5   :  { %s841_s16 = smov 0   ;;  %s843_s17 = smov 0  }
   0x6 LB: > { %s574_s18 = sadd.s32 4294967295, %s806_s17   ;;  %s575_s19 = sadd.s32 4294967294, %s806_s17   ;;  %s806_s17 = sphi %s843_s17, %s19_s17   ;;  %s802_s16 = sphi %s841_s16, %s1005_s16   ;;  %s798_s15 = sphi %s839_s15, %s1004_s15   ;;  %s794_s14 = sphi %s837_s14, %s1003_s14   ;;  %s790_s13 = sphi %s835_s13, %s1002_s13   ;;  %s786_s12 = sphi %s833_s12, %s1001_s12  }
   0x7   : > { %s38_s20 = sadd.s32 1, %s802_s16  ;;  %s45_s21 = sadd.s32 1, %s794_s14 }
   0x8   : > { %p40_p0 = scmp.ge.s32.totalorder %s38_s20, 4  ;;  %p52_p1 = scmp.ne.s32.totalorder %s794_s14, %s790_s13 }
   0x9   : > { %p53_p2 = scmp.eq.s32.totalorder %s806_s17, 0  ;;  %p58_p3 = scmp.ne.s32.totalorder %s790_s13, %s786_s12 }
   0xa   : > { %s1007_s20 = smov (%p40_p0, %s38_s20), 0  ;;  %p59_p5 = scmp.eq.s32.totalorder %s574_s18, 0 }
   0xb   : > { %p874_p4 = por %p53_p2, %p52_p1  ;;  %s42_s23 = ssub.s32 %s802_s16, %s1007_s20 }
   0xc   : > { %p138_p6 = scmp.eq.s32.totalorder %s574_s18, 3  ;;  %p43_p7 = scmp.eq.s32.totalorder %s42_s23, 0 }
   0xd   : > { %p880_p8 = por %p59_p5, %p58_p3  ;;  %p144_p10 = scmp.eq.s32.totalorder %s575_s19, 3 }
   0xe   : > { %p884_p9 = por %p138_p6, %p52_p1  ;;  %p639_p12 = scmp.lt.s32.totalorder %s806_s17, 4 }
   0xf   : > { %s889_s26 = scalar_select %p43_p7, %s794_s14, %s45_s21  }
  0x10   : > { %p891_p11 = por %p144_p10, %p58_p3  ;;  %s180_s28 = sand.u32 1, %s794_s14  }
  0x11   : > { %s580_s29 = sshll.u32 %s180_s28, 3  ;;  %s604_s30 = sshll.u32 %s802_s16, 7 }
  0x12   : > { %s190_s6 = scalar_lea.hbm %s992_s0, %s604_s30  ;;  %s184_s7 = scalar_lea.vmem [#allocation3], %s580_s29 }
  0x13   : > { %s191_s8 = sshll.u32 %s184_s7, 4  ;;  %p903_p13 = pnand %p639_p12, %p874_p4  ;;  %s192_s8 = int_to_ptr.vmem [resolvable:$true] %s191_s8 }
  0x14   : > { %p583_p0 = scmp.ge.s32.totalorder %s806_s17, 1  ;;  %s181_s10 = scalar_lea.sflag [#allocation4], %s180_s28 }
  0x15   : > { %p700_p1 = pneg %p903_p13  ;;  %s711_s11 = scalar_lea.vmem %s192_s8, 128 }
  0x16   : > { %p712_p2 = scmp.ne.s32.totalorder %s192_s8, %s711_s11  ;;  %s808_s18 = smov [#allocation3]  }
  0x17   : > { %s716_s19 = sshll.u32 %s808_s18, 4  ;;  %s717_s19 = int_to_ptr.vmem [resolvable:$false] %s716_s19 }
  0x18   : > { %p714_p3 = pnand %p712_p2, %p700_p1  ;;  %s718_s21 = scalar_lea.vmem %s717_s19, 256 }
  0x19   : > { %p719_p6 = scmp.lt.s32.totalorder %s192_s8, %s717_s19  ;;  %p720_p7 = scmp.lt.s32.totalorder %s718_s21, %s711_s11 }
  0x1a   : > { %p715_p5 = pneg %p714_p3 }
  0x1b   : > { %p721_p10 = por %p720_p7, %p719_p6 }
  0x1d   : > { %p722_p4 = pnand %p721_p10, %p715_p5 }
  0x1f   : > { %725 = shalt.err (!%p722_p4)
}
  0x20   : > { %s809_s22 = smov 64   ;;  %s810_s23 = smov 4  }
  0x21   : > { %634 = dma.hbm_to_vmem [thread:$0]  (!%p903_p13), %s190_s6, 128, %s192_s8, %s181_s10, %s809_s22, %s809_s22, %s810_s23  }
  0x22   : > { %p199_p12 = scmp.lt.s32.totalorder %s806_s17, 5 }
  0x24   : > { %p200_p1 = pnand %p583_p0, %p199_p12 }
  0x25   : > { %s916_s28 = sand.u32 (!%p200_p1), 1, %s790_s13  }
  0x26   : > { %203 = sbr.rel (%p200_p1) target bundleno = 475 (0x1db), region = 32  ;;  %s584_s29 = sshll.u32 (!%p200_p1), %s916_s28, 3 }
  0x27   : > { %s206_s30 = scalar_lea.sflag (!%p200_p1), [#allocation4], %s916_s28  ;;  %s209_s4 = scalar_lea.vmem (!%p200_p1), [#allocation3], %s584_s29 }
  0x2b   : > { %777 = dma.done.wait (%p880_p8), %s206_s30, 128  }
  0x2c   : > { %779 = vsyncadd (%p880_p8), %s206_s30, 4294967168  ;;  %v692_v0 = vld [vmem:[%s209_s4] sm:$0xff]   ;;  %vm280_vm0 = vcmask 130048   ;;  %v693_v1 = vld [vmem:[%s993_s1] sm:$0xff]   ;;  %vm352_vm1 = vcmask 125952   ;;  %s601_s24 = sshll.u32 %s798_s15, 7 }
  0x2d   : > { %615 = vmatprep.subr.bf16.mxu0 %v692_v0  ;;  %v694_v2 = vld [vmem:[%s993_s1 + $0x8] sm:$0xff]   ;;  %617 = vmatprep.mubr.msk.bf16.mxu0 %vm280_vm0, %v693_v1  ;;  %v695_v3 = vld [vmem:[%s994_s2] sm:$0xff]   ;;  %s240_s11 = scalar_lea.vmem [#allocation6], %s584_s29  ;;  %vm443_vm8 = vcmask 261120   ;;  %s945_s22 = scalar_lea.hbm %s995_s3, %s601_s24  ;;  %v811_v18 = vmov 0  }
  0x2e   : > { %616 = vmatpush3.bf16.msra.mxu0 %v692_v0  ;;  %621 = vmatprep.subr.bf16.mxu1 %v695_v3  ;;  %s461_s18 = sshll.u32 %s240_s11, 4  ;;  %s446_s15 = scalar_lea.sflag [#allocation5], %s916_s28  ;;  %s947_s18 = int_to_ptr.vmem [resolvable:$true] %s461_s18 }
  0x2f   : > { %622 = vmatpush3.bf16.msra.mxu1 %v695_v3  ;;  %s726_s23 = scalar_lea.vmem %s947_s18, 128  ;;  %s812_s29 = smov [#allocation6]  }
  0x30   : > { %p727_p8 = scmp.ne.s32.totalorder %s947_s18, %s726_s23  ;;  %s730_s30 = sshll.u32 %s812_s29, 4  ;;  %s731_s30 = int_to_ptr.vmem [resolvable:$false] %s730_s30 }
  0x31   : > { %618 = vmatmul.mubr.msk.bf16.vlgmr.msra.gmra.mxu0 %vm280_vm0, %v694_v2  ;;  %s732_s4 = scalar_lea.vmem %s731_s30, 256  ;;  %p733_p2 = scmp.lt.s32.totalorder %s947_s18, %s731_s30 }
  0x32   : > { %p728_p13 = pnand %p727_p8, %p884_p9  ;;  %p734_p3 = scmp.lt.s32.totalorder %s732_s4, %s726_s23 }
  0x34   : > { %p729_p0 = pneg %p728_p13  ;;  %p735_p5 = por %p734_p3, %p733_p2 }
  0x36   : > { %p736_p6 = pnand %p735_p5, %p729_p0 }
  0xf1   : > { %v619_v4 = vpop.f32.mrf.mxu0 }
  0xf2   : > { %v607_v5 = vpack.c.bf16 %v619_v4, %v619_v4 }
  0xf3   : > { %v321_v6 = vpop.f32.mrf.mxu0 }
  0xf4   : > { %355 = vst.msk [vmem:[#allocation2 + $0x8] sm:$0xf] %vm352_vm1, %v607_v5  ;;  %v605_v7 = vpack.c.bf16 %v321_v6, %v321_v6 }
  0xf5   : > { %v620_v8 = vpop.f32.mrf.mxu0 }
  0xf6   : > { %353 = vst.msk [vmem:[#allocation2] sm:$0xf] %vm352_vm1, %v605_v7  ;;  %v608_v9 = vpack.c.bf16 %v620_v8, %v620_v8 }
  0xf7   : > { %v324_v10 = vpop.f32.mrf.mxu0 }
  0xf8   : > { %356 = vst.msk [vmem:[#allocation2 + $0xc] sm:$0xf] %vm352_vm1, %v608_v9  ;;  %v606_v11 = vpack.c.bf16 %v324_v10, %v324_v10 }
  0xfa   : > { %354 = vst.msk [vmem:[#allocation2 + $0x4] sm:$0xf] %vm352_vm1, %v606_v11 }
  0xff   : > { %v697_v13 = vld [vmem:[#allocation2 + $0x8] sm:$0xff]  }
 0x101   : > { %v696_v12 = vld [vmem:[#allocation2] sm:$0xff]  }
 0x102   : > { %623 = vmatprep.mubr.msk.bf16.mxu1 %vm280_vm0, %v696_v12 }
 0x103   : > { %624 = vmatmul.mubr.msk.bf16.vlgmr.msra.gmra.mxu1 %vm280_vm0, %v697_v13 }
 0x1c3   : > { %v625_v14 = vpop.f32.mrf.mxu1 }
 0x1c4   : > { %vm437_vm3 = vcmp.gt.f32.partialorder %v625_v14, 0.0 }
 0x1c5   : > { %v420_v15 = vpop.f32.mrf.mxu1 }
 0x1c6   : > { %vm435_vm4 = vcmp.gt.f32.partialorder %v420_v15, 0.0 }
 0x1c7   : > { %v626_v16 = vpop.f32.mrf.mxu1 }
 0x1c8   : > { %vm438_vm2 = vcmp.gt.f32.partialorder %v626_v16, 0.0 }
 0x1c9   : > { %v423_v17 = vpop.f32.mrf.mxu1  ;;  %vm440_vm5 = vmpackc.low %vm438_vm2, %vm437_vm3 }
 0x1ca   : > { %vm436_vm6 = vcmp.gt.f32.partialorder %v423_v17, 0.0 }
 0x1cb   : > { %vm439_vm7 = vmpackc.low %vm436_vm6, %vm435_vm4 }
 0x1cc   : > { %vm441_vm9 = vmpackc.even %vm440_vm5, %vm439_vm7 }
 0x1cd   : > { %v442_v19 = vsel %vm441_vm9, 16843009, %v811_v18 }
 0x1ce   : > { %444 = vst.msk [vmem:[%s240_s11] sm:$0xff] %vm443_vm8, %v442_v19 }
 0x1cf   : > { %739 = shalt.err (!%p736_p6)
}
 0x1d0   : > { %s740_s5 = scalar_lea.hbm %s945_s22, 128  ;;  %s744_s7 = scalar_lea.hbm %s995_s3, 512 }
 0x1d1   : > { %p741_p7 = scmp.ne.s32.totalorder %s945_s22, %s740_s5  ;;  %p745_p12 = scmp.lt.s32.totalorder %s945_s22, %s995_s3 }
 0x1d2   : > { %p746_p1 = scmp.lt.s32.totalorder %s744_s7, %s740_s5 }
 0x1d3   : > { %p742_p10 = pnand %p741_p7, %p884_p9 }
 0x1d4   : > { %p747_p8 = por %p746_p1, %p745_p12 }
 0x1d5   : > { %p743_p4 = pneg %p742_p10 }
 0x1d7   : > { %p748_p13 = pnand %p747_p8, %p743_p4 }
 0x1d9   : > { %751 = shalt.err (!%p748_p13)
}
 0x1da   : > { %629 = dma.vmem_to_hbm [thread:$0]  (%p884_p9), %s947_s18, 128, %s945_s22, %s446_s15  }
 0x1db PF: > { %p640_p0 = scmp.ge.s32.totalorder %s806_s17, 2  ;;  %s473_s10 = sand.u32 1, %s786_s12  }
 0x1dc   : > { %s474_s24 = scalar_lea.sflag [#allocation5], %s473_s10 }
 0x1dd   : > { %p636_p2 = pnand %p640_p0, %p891_p11 }
 0x1df   : > { %p637_p3 = pneg %p636_p2 }
 0x1e1   : > { %781 = dma.done.wait (%p637_p3), %s474_s24, 128  }
 0x1e2   : > { %783 = vsyncadd (%p637_p3), %s474_s24, 4294967168  ;;  %s19_s17 = sadd.s32 1, %s806_s17   ;;  %s1001_s12 = smov %s790_s13 }
 0x1e3   : > { %p16_p5 = scmp.ge.s32.totalorder %s19_s17, 6   ;;  %s1002_s13 = smov %s794_s14 }
 0x1e4   : > { %s1003_s14 = smov %s889_s26  ;;  %s1004_s15 = smov %s802_s16 }
 0x1e5   : > { %s1005_s16 = smov %s1007_s20  ;;  %18 = sbr.rel (!%p16_p5) target bundleno = 6 (0x6), region = 87 }
 0x1ea   :  { %479 = vsyncpa [#allocation4], 1 }
 0x1eb   :  { %481 = vsyncpa [#allocation4 + $0x1], 1 }
 0x1ec   :  { %482 = vsyncpa [#allocation5], 1 }
 0x1ed   :  { %484 = vsyncpa [#allocation5 + $0x1], 1 }

</bundles_post_ra>
